<compile_context>
chip_gen: v5e
topology: v5e:2x2
jax: 0.10.0
libtpu: 0.0.40
codegen_flags: <defaults>
</compile_context>

<pallas_src>
import functools

import jax
import jax.numpy as jnp
from jax import lax
from jax.experimental import pallas as pl
from jax.experimental.pallas import tpu as pltpu


# ----------------------------- config (toy size) ----------------------------
VOCAB_SIZE = 64
HIDDEN = 32
PAD_TOKEN_ID = 1
TOKEN_TYPE_SIZE = 4            # padding_idx = TOKEN_TYPE_SIZE - 1
MAX_ITEM_EMB = 10              # padding_idx = MAX_ITEM_EMB - 1
MAX_POS_EMB = 32               # padding_idx = PAD_TOKEN_ID
LAYER_NORM_EPS = 1e-12
BATCH = 2
SEQ = 8

# fused-table row layout (disjoint ranges; K padded to exactly 128 rows ->
# one MXU pass on v5e; gamma/beta on sublane-aligned tail rows)
WORD_OFF = 0
POS_OFF = VOCAB_SIZE                               # 64
TYPE_OFF = POS_OFF + MAX_POS_EMB                   # 96
ITEM_OFF = TYPE_OFF + TOKEN_TYPE_SIZE              # 100
TOTAL_ROWS = ITEM_OFF + MAX_ITEM_EMB               # 110
GAMMA_ROW = ((TOTAL_ROWS + 7) // 8) * 8            # 112 (sublane-aligned)
BETA_ROW = GAMMA_ROW + 1                           # 113
NROWS = ((BETA_ROW + 1 + 127) // 128) * 128        # 128
# NOTE: position ids reach at most S + PAD_TOKEN_ID; with S=8 that is 9 < 32,
# so position one-hots never spill into the TYPE_OFF range, and no in-range id
# can ever hit the gamma/beta rows (112/113).


# ------------------------------- kernel -------------------------------------
def _embeddings_kernel(ids_ref, table_ref, out_ref, *, seq, pad_id, eps):
    # ids_ref:   (B*S, 3) int32, columns = [input_id, token_type_id, item_pos_id],
    #            token index (b*S + s) on sublanes (b-major flattening).
    # table_ref: (NROWS, H) bf16 fused table: rows [0,64) word, [64,96) pos,
    #            [96,100) type, [100,110) item, 112 gamma, 113 beta, rest zero.
    # out_ref:   (B*S, H) f32
    bs = ids_ref.shape[0]

    ids = ids_ref[...]                                            # (BS, 3)
    wid = ids[:, 0:1]                                             # (BS, 1)
    tt = ids[:, 1:2]                                              # (BS, 1)
    itp = ids[:, 2:3]                                             # (BS, 1)

    # --- RoBERTa position ids: cumsum(mask) * mask + pad --------------------
    # Segmented (per-sequence) inclusive scan over the sublane/token axis via a
    # log2(S)-step roll-and-add: XLU sublane rotate + VPU masked add, no MXU
    # pass, no O(BS^2) materialization. Cross-sequence / wrap-around
    # contributions are masked out by the (token-in-sequence >= shift) test.
    mask_f = (wid != pad_id).astype(jnp.float32)                  # (BS, 1)
    tok = lax.broadcasted_iota(jnp.int32, (bs, 1), 0) % seq       # pos within seq
    csum = mask_f
    shift = 1
    while shift < seq:                                            # unrolled, static
        rolled = pltpu.roll(csum, shift, 0)                       # csum[i - shift]
        csum = csum + jnp.where(tok >= shift, rolled, 0.0)
        shift *= 2
    pos = (csum * mask_f + jnp.float32(pad_id)).astype(jnp.int32)  # (BS, 1)

    # --- fused one-hot gather: ONE bf16 MXU matmul sums all 4 embeddings -----
    # bf16 is exact for the 0/1 one-hot; bf16 table -> native single-pass MXU;
    # accumulation is f32 (preferred_element_type).
    lanes = lax.broadcasted_iota(jnp.int32, (bs, NROWS), 1)       # (BS, NROWS)
    onehot = ((lanes == wid + WORD_OFF)
              | (lanes == pos + POS_OFF)
              | (lanes == tt + TYPE_OFF)
              | (lanes == itp + ITEM_OFF)).astype(jnp.bfloat16)   # (BS, NROWS)
    emb = jnp.dot(onehot, table_ref[...],
                  preferred_element_type=jnp.float32)             # (BS, H) f32

    # --- LayerNorm over hidden dim + affine (gamma/beta live in the table) ---
    mean = jnp.mean(emb, axis=-1, keepdims=True)
    centered = emb - mean
    var = jnp.mean(centered * centered, axis=-1, keepdims=True)
    normed = centered * lax.rsqrt(var + eps)
    gb = table_ref[GAMMA_ROW:GAMMA_ROW + 2, :].astype(jnp.float32)  # (2, H)
    out = normed * gb[0:1, :] + gb[1:2, :]                          # (BS, H)

    # dropout: identity at inference
    out_ref[...] = out.astype(out_ref.dtype)


# --------------------------- one-time param prep -----------------------------
def build_fused_table(params, dtype=jnp.bfloat16):
    """One-time layout prep (hoisted out of the per-call path): fuse the four
    embedding tables + LayerNorm gamma/beta into a single (NROWS, H) table with
    disjoint row ranges. bf16 halves DMA/VMEM bytes; the one-hot gather stays
    exact, weights are bf16-rounded (see tolerance note in __main__)."""
    H = params["word_emb"].shape[1]
    t = jnp.zeros((NROWS, H), jnp.float32)
    t = t.at[WORD_OFF:WORD_OFF + VOCAB_SIZE].set(params["word_emb"])
    t = t.at[POS_OFF:POS_OFF + MAX_POS_EMB].set(params["pos_emb"])
    t = t.at[TYPE_OFF:TYPE_OFF + TOKEN_TYPE_SIZE].set(params["type_emb"])
    t = t.at[ITEM_OFF:ITEM_OFF + MAX_ITEM_EMB].set(params["item_emb"])
    t = t.at[GAMMA_ROW].set(params["ln_gamma"][0])
    t = t.at[BETA_ROW].set(params["ln_beta"][0])
    return t.astype(dtype)


# ------------------------------- wrapper -------------------------------------
@jax.jit
def rec_roberta_embeddings(input_ids, token_type_ids, item_position_ids,
                           fused_table):
    """input_ids / token_type_ids / item_position_ids: (B, S) int32.
    fused_table: (NROWS, H) from build_fused_table (precomputed once)."""
    B, S = input_ids.shape
    H = fused_table.shape[1]
    BS = B * S

    # Layout plumbing only: 3 id tensors -> one sublane-major (BS, 3) array.
    ids = jnp.stack(
        [input_ids.reshape(BS),
         token_type_ids.reshape(BS),
         item_position_ids.reshape(BS)], axis=-1).astype(jnp.int32)   # (BS, 3)

    kernel = functools.partial(_embeddings_kernel, seq=S,
                               pad_id=PAD_TOKEN_ID, eps=LAYER_NORM_EPS)

    cost = pl.CostEstimate(
        flops=2 * BS * NROWS * H + 12 * BS * H,
        transcendentals=BS,
        bytes_accessed=ids.size * 4 + fused_table.size * 2 + BS * H * 4)

    vmem = pl.BlockSpec(memory_space=pltpu.MemorySpace.VMEM)
    # Gridless single invocation (BS=16 tokens): per-step pipeline overhead of a
    # grid would dominate. H=32 output is lane-narrow (masked stores) but the
    # kernel is overhead-bound at this size, so relayouting is not worth it.
    # TODO(synk): at large B*S, tile tokens (>=128 rows per step) over a grid
    #             with dimension_semantics=("parallel",) so both v7x TensorCores
    #             are used, and keep H a multiple of 128 for lane-dense stores.
    out = pl.pallas_call(
        kernel,
        out_shape=jax.ShapeDtypeStruct((BS, H), jnp.float32),
        in_specs=[vmem, vmem],
        out_specs=vmem,
        cost_estimate=cost,
    )(ids, fused_table)
    return out.reshape(B, S, H)


# --------------------------- pure-JAX reference ------------------------------
def reference(input_ids, token_type_ids, item_position_ids, params):
    mask = (input_ids != PAD_TOKEN_ID).astype(jnp.int32)
    position_ids = jnp.cumsum(mask, axis=1) * mask + PAD_TOKEN_ID
    emb = (params["word_emb"][input_ids]
           + params["pos_emb"][position_ids]
           + params["type_emb"][token_type_ids]
           + params["item_emb"][item_position_ids])
    mean = jnp.mean(emb, axis=-1, keepdims=True)
    var = jnp.mean((emb - mean) ** 2, axis=-1, keepdims=True)
    normed = (emb - mean) / jnp.sqrt(var + LAYER_NORM_EPS)
    return normed * params["ln_gamma"][0] + params["ln_beta"][0]


def _init_params(key):
    ks = jax.random.split(key, 4)
    word = 0.02 * jax.random.normal(ks[0], (VOCAB_SIZE, HIDDEN), jnp.float32)
    pos = 0.02 * jax.random.normal(ks[1], (MAX_POS_EMB, HIDDEN), jnp.float32)
    typ = 0.02 * jax.random.normal(ks[2], (TOKEN_TYPE_SIZE, HIDDEN), jnp.float32)
    item = 0.02 * jax.random.normal(ks[3], (MAX_ITEM_EMB, HIDDEN), jnp.float32)
    # nn.Embedding padding_idx rows are zero at init
    word = word.at[PAD_TOKEN_ID].set(0.0)
    pos = pos.at[PAD_TOKEN_ID].set(0.0)
    typ = typ.at[TOKEN_TYPE_SIZE - 1].set(0.0)
    item = item.at[MAX_ITEM_EMB - 1].set(0.0)
    return {
        "word_emb": word,
        "pos_emb": pos,
        "type_emb": typ,
        "item_emb": item,
        "ln_gamma": jnp.ones((1, HIDDEN), jnp.float32),
        "ln_beta": jnp.zeros((1, HIDDEN), jnp.float32),
    }


# --------------------------------- main --------------------------------------
if __name__ == "__main__":
    key = jax.random.PRNGKey(0)
    kp, k1, k2, k3 = jax.random.split(key, 4)
    params = _init_params(kp)

    # One-time prep, hoisted out of the per-call path (perf review item #1/#2).
    fused_table = jax.block_until_ready(build_fused_table(params))

    input_ids = jax.random.randint(k1, (BATCH, SEQ), 2, VOCAB_SIZE, jnp.int32)
    # put a couple of pad tokens at the tail of each sequence
    input_ids = input_ids.at[:, -2:].set(PAD_TOKEN_ID)
    token_type_ids = jax.random.randint(
        k2, (BATCH, SEQ), 0, TOKEN_TYPE_SIZE - 1, jnp.int32)
    item_position_ids = jax.random.randint(
        k3, (BATCH, SEQ), 0, MAX_ITEM_EMB - 1, jnp.int32)

    out = rec_roberta_embeddings(input_ids, token_type_ids,
                                 item_position_ids, fused_table)
    out = jax.block_until_ready(out)
    assert out.shape == (BATCH, SEQ, HIDDEN)

    # Tight check: kernel math vs a reference using the same bf16-rounded
    # weights (isolates kernel correctness from the deliberate bf16 table cast).
    q = lambda a: a.astype(jnp.bfloat16).astype(jnp.float32)
    params_q = {k: q(v) for k, v in params.items()}
    ref_q = reference(input_ids, token_type_ids, item_position_ids, params_q)
    assert jnp.allclose(out, ref_q, atol=1e-3, rtol=0.0), \
        f"kernel-math max abs err {jnp.max(jnp.abs(out - ref_q))}"

    # Loose check vs the exact f32 module semantics; the only deviation is the
    # bf16 rounding of the fused table (perf-review tolerance note, ~1e-2).
    ref = reference(input_ids, token_type_ids, item_position_ids, params)
    assert jnp.allclose(out, ref, atol=5e-2, rtol=0.0), \
        f"bf16-weight max abs err {jnp.max(jnp.abs(out - ref))}"

    print("KERNEL_OK")
</pallas_src>

<mosaic_0001>
module attributes {stable_mosaic.version = 11 : i64} {
  func.func @_embeddings_kernel(%arg0: memref<16x3xi32, #tpu.memory_space<vmem>>, %arg1: memref<128x32xbf16, #tpu.memory_space<vmem>>, %arg2: memref<16x32xf32, #tpu.memory_space<vmem>>) attributes {dimension_semantics = [], scalar_prefetch = 0 : i64, scratch_operands = 0 : i64, tpu.core_type = #tpu.core_type<tc>} {
    %c0 = arith.constant 0 : index
    %c0_0 = arith.constant 0 : index
    %0 = vector.load %arg0[%c0, %c0_0] : memref<16x3xi32, #tpu.memory_space<vmem>>, vector<16x3xi32>
    %1 = vector.extract_strided_slice %0 {offsets = [0, 0], sizes = [16, 1], strides = [1, 1]} : vector<16x3xi32> to vector<16x1xi32>
    %2 = vector.extract_strided_slice %0 {offsets = [0, 1], sizes = [16, 1], strides = [1, 1]} : vector<16x3xi32> to vector<16x1xi32>
    %3 = vector.extract_strided_slice %0 {offsets = [0, 2], sizes = [16, 1], strides = [1, 1]} : vector<16x3xi32> to vector<16x1xi32>
    %c1_i32 = arith.constant 1 : i32
    %4 = vector.broadcast %c1_i32 : i32 to vector<16x1xi32>
    %5 = arith.cmpi ne, %1, %4 : vector<16x1xi32>
    %6 = arith.extui %5 : vector<16x1xi1> to vector<16x1xi32>
    %7 = arith.sitofp %6 : vector<16x1xi32> to vector<16x1xf32>
    %8 = tpu.iota {dimensions = array<i32: 0>} : vector<16x1xi32>
    %c8_i32 = arith.constant 8 : i32
    %c0_i32 = arith.constant 0 : i32
    %9 = arith.cmpi eq, %c8_i32, %c0_i32 : i32
    %c1_i32_1 = arith.constant 1 : i32
    %10 = arith.select %9, %c1_i32_1, %c8_i32 : i32
    %11 = vector.broadcast %10 : i32 to vector<16x1xi32>
    %12 = arith.remsi %8, %11 : vector<16x1xi32>
    %c0_i32_2 = arith.constant 0 : i32
    %13 = vector.broadcast %c0_i32_2 : i32 to vector<16x1xi32>
    %14 = arith.cmpi ne, %12, %13 : vector<16x1xi32>
    %c0_i32_3 = arith.constant 0 : i32
    %15 = vector.broadcast %c0_i32_3 : i32 to vector<16x1xi32>
    %16 = arith.cmpi slt, %12, %15 : vector<16x1xi32>
    %c0_i32_4 = arith.constant 0 : i32
    %17 = arith.cmpi slt, %10, %c0_i32_4 : i32
    %18 = vector.broadcast %17 : i1 to vector<16x1xi1>
    %19 = vector.broadcast %18 : vector<16x1xi1> to vector<16x1xi1>
    %20 = arith.xori %16, %19 : vector<16x1xi1>
    %21 = arith.andi %20, %14 : vector<16x1xi1>
    %22 = vector.broadcast %10 : i32 to vector<16x1xi32>
    %23 = arith.addi %12, %22 : vector<16x1xi32>
    %24 = arith.select %21, %23, %12 : vector<16x1xi1>, vector<16x1xi32>
    %c1_i32_5 = arith.constant 1 : i32
    %25 = tpu.dynamic_rotate %7 by %c1_i32_5 dim 0 : vector<16x1xf32>, i32 -> vector<16x1xf32>
    %c1_i32_6 = arith.constant 1 : i32
    %26 = vector.broadcast %c1_i32_6 : i32 to vector<16x1xi32>
    %27 = arith.cmpi sge, %24, %26 : vector<16x1xi32>
    %cst = arith.constant 0.000000e+00 : f32
    %28 = vector.broadcast %cst : f32 to vector<16x1xf32>
    %29 = arith.select %27, %25, %28 : vector<16x1xi1>, vector<16x1xf32>
    %30 = arith.addf %7, %29 : vector<16x1xf32>
    %c2_i32 = arith.constant 2 : i32
    %31 = tpu.dynamic_rotate %30 by %c2_i32 dim 0 : vector<16x1xf32>, i32 -> vector<16x1xf32>
    %c2_i32_7 = arith.constant 2 : i32
    %32 = vector.broadcast %c2_i32_7 : i32 to vector<16x1xi32>
    %33 = arith.cmpi sge, %24, %32 : vector<16x1xi32>
    %cst_8 = arith.constant 0.000000e+00 : f32
    %34 = vector.broadcast %cst_8 : f32 to vector<16x1xf32>
    %35 = arith.select %33, %31, %34 : vector<16x1xi1>, vector<16x1xf32>
    %36 = arith.addf %30, %35 : vector<16x1xf32>
    %c4_i32 = arith.constant 4 : i32
    %37 = tpu.dynamic_rotate %36 by %c4_i32 dim 0 : vector<16x1xf32>, i32 -> vector<16x1xf32>
    %c4_i32_9 = arith.constant 4 : i32
    %38 = vector.broadcast %c4_i32_9 : i32 to vector<16x1xi32>
    %39 = arith.cmpi sge, %24, %38 : vector<16x1xi32>
    %cst_10 = arith.constant 0.000000e+00 : f32
    %40 = vector.broadcast %cst_10 : f32 to vector<16x1xf32>
    %41 = arith.select %39, %37, %40 : vector<16x1xi1>, vector<16x1xf32>
    %42 = arith.addf %36, %41 : vector<16x1xf32>
    %43 = arith.mulf %42, %7 : vector<16x1xf32>
    %cst_11 = arith.constant 1.000000e+00 : f32
    %44 = vector.broadcast %cst_11 : f32 to vector<16x1xf32>
    %45 = arith.addf %43, %44 : vector<16x1xf32>
    %46 = arith.fptosi %45 : vector<16x1xf32> to vector<16x1xi32>
    %47 = tpu.iota {dimensions = array<i32: 1>} : vector<16x128xi32>
    %c0_i32_12 = arith.constant 0 : i32
    %48 = vector.broadcast %c0_i32_12 : i32 to vector<16x1xi32>
    %49 = arith.addi %1, %48 : vector<16x1xi32>
    %50 = vector.broadcast %49 : vector<16x1xi32> to vector<16x128xi32>
    %51 = arith.cmpi eq, %47, %50 : vector<16x128xi32>
    %c64_i32 = arith.constant 64 : i32
    %52 = vector.broadcast %c64_i32 : i32 to vector<16x1xi32>
    %53 = arith.addi %46, %52 : vector<16x1xi32>
    %54 = vector.broadcast %53 : vector<16x1xi32> to vector<16x128xi32>
    %55 = arith.cmpi eq, %47, %54 : vector<16x128xi32>
    %56 = arith.ori %51, %55 : vector<16x128xi1>
    %c96_i32 = arith.constant 96 : i32
    %57 = vector.broadcast %c96_i32 : i32 to vector<16x1xi32>
    %58 = arith.addi %2, %57 : vector<16x1xi32>
    %59 = vector.broadcast %58 : vector<16x1xi32> to vector<16x128xi32>
    %60 = arith.cmpi eq, %47, %59 : vector<16x128xi32>
    %61 = arith.ori %56, %60 : vector<16x128xi1>
    %c100_i32 = arith.constant 100 : i32
    %62 = vector.broadcast %c100_i32 : i32 to vector<16x1xi32>
    %63 = arith.addi %3, %62 : vector<16x1xi32>
    %64 = vector.broadcast %63 : vector<16x1xi32> to vector<16x128xi32>
    %65 = arith.cmpi eq, %47, %64 : vector<16x128xi32>
    %66 = arith.ori %61, %65 : vector<16x128xi1>
    %67 = arith.extui %66 : vector<16x128xi1> to vector<16x128xi32>
    %68 = arith.sitofp %67 : vector<16x128xi32> to vector<16x128xf32>
    %69 = arith.truncf %68 : vector<16x128xf32> to vector<16x128xbf16>
    %c0_13 = arith.constant 0 : index
    %c0_14 = arith.constant 0 : index
    %70 = vector.load %arg1[%c0_13, %c0_14] : memref<128x32xbf16, #tpu.memory_space<vmem>>, vector<128x32xbf16>
    %cst_15 = arith.constant dense<0.000000e+00> : vector<16x32xf32>
    %71 = tpu.matmul %69, %70, %cst_15 {dimension_numbers = #tpu.dot_dimension_numbers<[1], [0], [0], [1], [0, 0, 1, 1], [], []>} : vector<16x128xbf16>, vector<128x32xbf16>, vector<16x32xf32> -> vector<16x32xf32>
    %cst_16 = arith.constant dense<0.000000e+00> : vector<16xf32>
    %72 = vector.multi_reduction <add>, %71, %cst_16 [1] : vector<16x32xf32> to vector<16xf32>
    %73 = vector.shape_cast %72 : vector<16xf32> to vector<16x1xf32>
    %cst_17 = arith.constant 3.200000e+01 : f32
    %74 = vector.broadcast %cst_17 : f32 to vector<16x1xf32>
    %75 = arith.divf %73, %74 : vector<16x1xf32>
    %76 = vector.broadcast %75 : vector<16x1xf32> to vector<16x32xf32>
    %77 = arith.subf %71, %76 : vector<16x32xf32>
    %78 = arith.mulf %77, %77 : vector<16x32xf32>
    %cst_18 = arith.constant dense<0.000000e+00> : vector<16xf32>
    %79 = vector.multi_reduction <add>, %78, %cst_18 [1] : vector<16x32xf32> to vector<16xf32>
    %80 = vector.shape_cast %79 : vector<16xf32> to vector<16x1xf32>
    %cst_19 = arith.constant 3.200000e+01 : f32
    %81 = vector.broadcast %cst_19 : f32 to vector<16x1xf32>
    %82 = arith.divf %80, %81 : vector<16x1xf32>
    %cst_20 = arith.constant 9.99999996E-13 : f32
    %83 = vector.broadcast %cst_20 : f32 to vector<16x1xf32>
    %84 = arith.addf %82, %83 : vector<16x1xf32>
    %85 = math.rsqrt %84 : vector<16x1xf32>
    %86 = vector.broadcast %85 : vector<16x1xf32> to vector<16x32xf32>
    %87 = arith.mulf %77, %86 : vector<16x32xf32>
    %c112 = arith.constant 112 : index
    %c0_21 = arith.constant 0 : index
    %88 = vector.load %arg1[%c112, %c0_21] : memref<128x32xbf16, #tpu.memory_space<vmem>>, vector<2x32xbf16>
    %89 = arith.extf %88 : vector<2x32xbf16> to vector<2x32xf32>
    %90 = vector.extract_strided_slice %89 {offsets = [0, 0], sizes = [1, 32], strides = [1, 1]} : vector<2x32xf32> to vector<1x32xf32>
    %91 = vector.broadcast %90 : vector<1x32xf32> to vector<16x32xf32>
    %92 = arith.mulf %87, %91 : vector<16x32xf32>
    %93 = vector.extract_strided_slice %89 {offsets = [1, 0], sizes = [1, 32], strides = [1, 1]} : vector<2x32xf32> to vector<1x32xf32>
    %94 = vector.broadcast %93 : vector<1x32xf32> to vector<16x32xf32>
    %95 = arith.addf %92, %94 : vector<16x32xf32>
    %c0_22 = arith.constant 0 : index
    %c0_23 = arith.constant 0 : index
    %96 = vector.load %arg2[%c0_22, %c0_23] : memref<16x32xf32, #tpu.memory_space<vmem>>, vector<16x32xf32>
    tpu.vector_store %arg2[%c0_22, %c0_23], %95 {strides = array<i32>} : memref<16x32xf32, #tpu.memory_space<vmem>>, vector<16x32xf32>,
    return
  }
}

</mosaic_0001>

<bundles_post_ra>
// kernel: rec_roberta_embeddings.1
= control target key start
LH: loop header
LB: loop body
LE: loop exit
PB: predicated region body
PF: predicated region fallthrough
CT: control target
= control target key end

     0   :  { %v20_v2 = vlaneseq  ;;  %s471_s0 = inlined_call_operand.vmem [shape: s32[16,3], index: 0, kind: input, shape index: {}]   ;;  %s472_s1 = inlined_call_operand.vmem [shape: bf16[128,32], index: 1, kind: input, shape index: {}]   ;;  %s473_s2 = inlined_call_operand.hbm [shape: f32[16,32], index: 2, kind: output, shape index: {}]  }
   0x1   :  { %v12_v0 = vld [vmem:[%s471_s0] sm:$0xff]  ;;  %v427_v1 = vld [vmem:[%s471_s0 + $0x8] sm:$0xff] }
   0x2   :  { %7 = vsyncpa [#allocation3], 0  ;;  %v397_v3 = vmov 0   ;;  %vm14_vm0 = vcmp.ne.s32.totalorder %v12_v0, 1  ;;  %vm15_vm1 = vcmp.ne.s32.totalorder %v427_v1, 1  ;;  %v398_v4 = vmov 0.0  }
   0x3   :  { %360 = vset.pattern.permute.xlu0 %v397_v3  ;;  %363 = vset.pattern.permute.xlu1 %v397_v3  ;;  %v295_v5 = vsel %vm14_vm0, 1.0, %v398_v4  ;;  %v296_v6 = vsel %vm15_vm1, 1.0, %v398_v4  ;;  %v21_v7 = vshrl.u32 %v20_v2, 7  ;;  %v120_v25 = vadd.s32 100, %v12_v0  ;;  %v340_v55 = vld [vmem:[%s472_s1 + $0x38] sm:$0xff]  ;;  %v339_v56 = vld [vmem:[%s472_s1 + $0x30] sm:$0xff] }
   0x4   :  { %89 = vperm.xlu0 %360, %v12_v0   ;;  %v47_v8 = vrot.slane %v295_v5, 7  ;;  %v48_v9 = vrot.slane %v296_v6, 7  ;;  %v399_v30 = vmov 2   ;;  %v108_v33 = vadd.s32 96, %v12_v0  ;;  %201 = vmatpush.bf16.msra.mxu0 %v340_v55  ;;  %v338_v57 = vld [vmem:[%s472_s1 + $0x28] sm:$0xff]  ;;  %v337_v58 = vld [vmem:[%s472_s1 + $0x20] sm:$0xff] }
   0x5   :  { %v22_v10 = vadd.s32 8, %v21_v7  ;;  %v27_v11 = vand.u32 7, %v21_v7  ;;  %vm49_vm2 = vcmp.lt.s32.totalorder %v21_v7, 1  ;;  %vm60_vm5 = vcmp.lt.s32.totalorder %v21_v7, 2  ;;  %v336_v59 = vld [vmem:[%s472_s1 + $0x18] sm:$0xff]  ;;  %v335_v60 = vld [vmem:[%s472_s1 + $0x10] sm:$0xff] }
   0x6   :  { %v51_v12 = vsel %vm49_vm2, %v48_v9, %v47_v8  ;;  %v50_v14 = vsel %vm49_vm2, %v47_v8, %v48_v9  ;;  %vm71_vm8 = vcmp.lt.s32.totalorder %v21_v7, 4  ;;  %v400_v36 = vmov 1   ;;  %v334_v61 = vld [vmem:[%s472_s1 + $0x8] sm:$0xff]  ;;  %v333_v62 = vld [vmem:[%s472_s1] sm:$0xff]  ;;  %s283_s5 = sshll.u32 %s473_s2, 4  ;;  %s404_s6 = smov 128   ;;  %s284_s5 = int_to_ptr.hbm [resolvable:$true] %s283_s5 }
   0x7   :  { %v34_v13 = vand.u32 7, %v22_v10  ;;  %vm52_vm3 = vcmp.ge.s32.totalorder %v27_v11, 1  ;;  %vm63_vm6 = vcmp.ge.s32.totalorder %v27_v11, 2  ;;  %vm74_vm10 = vcmp.ge.s32.totalorder %v27_v11, 4  ;;  %361 = vset.pattern.permute.xlu2 %v400_v36  ;;  %s405_s7 = smov 8  }
   0x8   :  { %v54_v15 = vsel %vm52_vm3, %v51_v12, 0.0  ;;  %111 = vperm.xlu2 %361, %v108_v33   ;;  %v109_v43 = vadd.s32 96, %v427_v1  ;;  %v121_v54 = vadd.s32 100, %v427_v1  ;;  %202 = vmatpush.bf16.msra.mxu0 %v339_v56  ;;  %v87_v4 = vand.u32 127, %v20_v2 }
   0x9   :  { %vm53_vm4 = vcmp.ge.s32.totalorder %v34_v13, 1  ;;  %v56_v16 = vadd.f32 %v295_v5, %v54_v15  ;;  %vm64_vm7 = vcmp.ge.s32.totalorder %v34_v13, 2  ;;  %vm75_vm9 = vcmp.ge.s32.totalorder %v34_v13, 4 }
   0xa   :  { %v55_v17 = vsel %vm53_vm4, %v50_v14, 0.0  ;;  %v401_v2 = vmov 1.0|1.0   ;;  %v402_v13 = vmov 32.0  }
   0xb   :  { %v57_v18 = vadd.f32 %v296_v6, %v55_v17  ;;  %v58_v19 = vrot.slane %v56_v16, 6  ;;  %365 = vrcp.f32 %v402_v13 }
   0xc   :  { %92 = vperm.xlu0 %360, %v427_v1   ;;  %203 = vmatpush.bf16.msra.mxu0 %v338_v57 }
   0xd   :  { %v59_v20 = vrot.slane %v57_v18, 6 }
   0xf   :  { %v61_v21 = vsel %vm60_vm5, %v58_v19, %v59_v20  ;;  %v62_v22 = vsel %vm60_vm5, %v59_v20, %v58_v19 }
  0x10   :  { %v65_v23 = vsel %vm63_vm6, %v62_v22, 0.0  ;;  %v66_v24 = vsel %vm64_vm7, %v61_v21, 0.0  ;;  %114 = vperm.xlu2 %361, %v109_v43   ;;  %204 = vmatpush.bf16.msra.mxu0 %v337_v58 }
  0x11   :  { %v67_v26 = vadd.f32 %v65_v23, %v56_v16  ;;  %v68_v27 = vadd.f32 %v66_v24, %v57_v18  ;;  %v366_v14 = vpop.eup %365 }
  0x12   :  { %v223_v15 = vmul.f32 32.0, %v366_v14 }
  0x13   :  { %v69_v28 = vrot.slane %v67_v26, 4  ;;  %v70_v29 = vrot.slane %v68_v27, 4 }
  0x14   :  { %362 = vset.pattern.permute.xlu0 %v399_v30  ;;  %205 = vmatpush.bf16.msra.mxu0 %v336_v59  ;;  %v224_v16 = vsub.f32 1.0, %v223_v15 }
  0x15   :  { %123 = vperm.xlu0 %362, %v120_v25   ;;  %v72_v31 = vsel %vm71_vm8, %v69_v28, %v70_v29  ;;  %v73_v32 = vsel %vm71_vm8, %v70_v29, %v69_v28 }
  0x16   :  { %v77_v34 = vsel %vm75_vm9, %v72_v31, 0.0  ;;  %v76_v35 = vsel %vm74_vm10, %v73_v32, 0.0  ;;  %v225_v17 = vmul.f32 %v366_v14, %v224_v16 }
  0x17   :  { %v79_v37 = vadd.f32 %v77_v34, %v68_v27  ;;  %v78_v38 = vadd.f32 %v76_v35, %v67_v26 }
  0x18   :  { %206 = vmatpush.bf16.msra.mxu0 %v335_v60  ;;  %v226_v18 = vadd.f32 %v366_v14, %v225_v17 }
  0x19   :  { %v81_v39 = vmul.f32 %v296_v6, %v79_v37  ;;  %v80_v40 = vmul.f32 %v295_v5, %v78_v38  ;;  %v267_v38 = vld [vmem:[%s472_s1 + $0x38] sm:$0x1]  ;;  %s403_s1 = smov [#allocation2]  }
  0x1a   :  { %s281_s30 = sshll.u32 %s403_s1, 4  ;;  %s282_s30 = int_to_ptr.vmem [resolvable:$true] %s281_s30 }
  0x1b   :  { %v83_v41 = vadd.f32 1.0, %v81_v39  ;;  %v82_v42 = vadd.f32 1.0, %v80_v40 }
  0x1c   :  { %207 = vmatpush.bf16.msra.mxu0 %v334_v61 }
  0x1d   :  { %vm341_vm11 = vcmp.lt.s32.totalorder %v82_v42, 0  ;;  %v342_v44 = vceil.f32 %v82_v42  ;;  %v343_v45 = vfloor.f32 %v82_v42  ;;  %vm346_vm12 = vcmp.lt.s32.totalorder %v83_v41, 0 }
  0x1e   :  { %v347_v46 = vceil.f32 %v83_v41  ;;  %v348_v47 = vfloor.f32 %v83_v41  ;;  %v268_v41 = vunpack.c.l.bf16 %v267_v38 }
  0x1f   :  { %v344_v48 = vsel %vm341_vm11, %v342_v44, %v343_v45 }
  0x20   :  { %v345_v49 = vcvt.f32.s32 %v344_v48  ;;  %v349_v50 = vsel %vm346_vm12, %v347_v46, %v348_v47  ;;  %208 = vmatpush.bf16.msra.mxu0 %v333_v62  ;;  %vm215_vm12 = vcmask 261120   ;;  %v269_v46 = vperm.slane %v268_v41, 0 }
  0x21   :  { %v350_v52 = vcvt.f32.s32 %v349_v50  ;;  %v272_v50 = vperm.slane %v268_v41, 1 }
  0x22   :  { %v96_v51 = vadd.s32 64, %v345_v49 }
  0x23   :  { %v97_v53 = vadd.s32 64, %v350_v52 }
  0x24   :  { %99 = vperm.xlu1 %363, %v96_v51  }
  0x2c   :  { %102 = vperm.xlu1 %363, %v97_v53  }
  0x34   :  { %364 = vset.pattern.permute.xlu1 %v399_v30 }
  0x35   :  { %126 = vperm.xlu1 %364, %v121_v54  }
  0x62   :  { %v112_v3 = vpop.permute.xlu2 %111 }
  0x63   :  { %vm116_vm15 = vcmp.eq.s32.totalorder %v87_v4, %v112_v3 }
  0x6a   :  { %v115_v7 = vpop.permute.xlu2 %114 }
  0x6b   :  { %vm117_vm5 = vcmp.eq.s32.totalorder %v87_v4, %v115_v7 }
  0x76   :  { %v90_v63 = vpop.permute.xlu0 %89 }
  0x77   :  { %vm94_vm13 = vcmp.eq.s32.totalorder %v87_v4, %v90_v63 }
  0x7e   :  { %v93_v1 = vpop.permute.xlu0 %92 }
  0x7f   :  { %vm95_vm2 = vcmp.eq.s32.totalorder %v87_v4, %v93_v1 }
  0x87   :  { %v124_v6 = vpop.permute.xlu0 %123 }
  0x88   :  { %vm128_vm4 = vcmp.eq.s32.totalorder %v87_v4, %v124_v6 }
  0x96   :  { %v100_v0 = vpop.permute.xlu1 %99 }
  0x97   :  { %vm104_vm14 = vcmp.eq.s32.totalorder %v87_v4, %v100_v0 }
  0x98   :  { %vm106_vm0 = vmor %vm94_vm13, %vm104_vm14  ;;  %vm227_vm13 = vweird.f32 %v366_v14 }
  0x99   :  { %vm118_vm3 = vmor %vm106_vm0, %vm116_vm15  ;;  %v228_v19 = vsel %vm227_vm13, %v366_v14, %v226_v18 }
  0x9a   :  { %vm130_vm7 = vmor %vm118_vm3, %vm128_vm4 }
  0x9e   :  { %v103_v5 = vpop.permute.xlu1 %102 }
  0x9f   :  { %vm105_vm1 = vcmp.eq.s32.totalorder %v87_v4, %v103_v5 }
  0xa0   :  { %vm107_vm6 = vmor %vm95_vm2, %vm105_vm1 }
  0xa1   :  { %vm119_vm8 = vmor %vm107_vm6, %vm117_vm5 }
  0xa7   :  { %v127_v8 = vpop.permute.xlu1 %126 }
  0xa8   :  { %vm129_vm9 = vcmp.eq.s32.totalorder %v87_v4, %v127_v8 }
  0xa9   :  { %vm131_vm10 = vmor %vm119_vm8, %vm129_vm9 }
  0xaa   :  { %vm331_vm11 = vmpackc.low %vm131_vm10, %vm130_vm7 }
  0xab   :  { %332 = vmatmul.msk.bf16.vlgmr.msra.gmra.mxu0 %vm331_vm11, %v401_v2 }
 0x128   :  { %v210_v9 = vpop.f32.mrf.mxu0 }
 0x129   :  { %v216_v10 = vsel %vm215_vm12, %v210_v9, 0.0 }
 0x12a   :  { %217 = vadd.xlane.f32.xlu2 %v216_v10 }
 0x130   :  { %v212_v11 = vpop.f32.mrf.mxu0 }
 0x131   :  { %v219_v12 = vsel %vm215_vm12, %v212_v11, 0.0 }
 0x132   :  { %220 = vadd.xlane.f32.xlu1 %v219_v12 }
 0x19d   :  { %v218_v20 = vpop.xlane.xlu2 %217 }
 0x19e   :  { %v229_v21 = vmul.f32 %v228_v19, %v218_v20 }
 0x1a0   :  { %v231_v22 = vsub.f32 %v210_v9, %v229_v21 }
 0x1a2   :  { %v233_v23 = vmul.f32 %v231_v22, %v231_v22 }
 0x1a4   :  { %v235_v24 = vsel %vm215_vm12, %v233_v23, 0.0 }
 0x1a5   :  { %236 = vadd.xlane.f32.xlu0 %v235_v24  ;;  %v221_v25 = vpop.xlane.xlu1 %220 }
 0x1a6   :  { %v230_v26 = vmul.f32 %v228_v19, %v221_v25 }
 0x1a8   :  { %v232_v27 = vsub.f32 %v212_v11, %v230_v26 }
 0x1aa   :  { %v234_v28 = vmul.f32 %v232_v27, %v232_v27 }
 0x1ac   :  { %v238_v29 = vsel %vm215_vm12, %v234_v28, 0.0 }
 0x1ad   :  { %239 = vadd.xlane.f32.xlu2 %v238_v29 }
 0x218   :  { %v237_v30 = vpop.xlane.xlu0 %236 }
 0x219   :  { %v241_v31 = vmul.f32 %v237_v30, %v228_v19 }
 0x21b   :  { %v243_v32 = vadd.f32 1e-12, %v241_v31 }
 0x21d   :  { %367 = vrsqrt.f32 %v243_v32  ;;  %vm251_vm15 = vweird.f32 %v243_v32 }
 0x220   :  { %v240_v33 = vpop.xlane.xlu2 %239 }
 0x221   :  { %v242_v34 = vmul.f32 %v240_v33, %v228_v19 }
 0x223   :  { %v368_v35 = vpop.eup %367  ;;  %v244_v36 = vadd.f32 1e-12, %v242_v34 }
 0x224   :  { %v246_v37 = vmul.f32 %v368_v35, %v243_v32  ;;  %vm252_vm14 = vweird.f32 %v368_v35 }
 0x225   :  { %369 = vrsqrt.f32 %v244_v36  ;;  %vm253_vm0 = vmor %vm251_vm15, %vm252_vm14  ;;  %vm261_vm2 = vweird.f32 %v244_v36 }
 0x226   :  { %v247_v39 = vmul.f32 %v368_v35, %v246_v37 }
 0x228   :  { %v248_v40 = vmul.f32 0.5, %v247_v39 }
 0x22a   :  { %v249_v42 = vsub.f32 1.5, %v248_v40 }
 0x22b   :  { %v370_v43 = vpop.eup %369 }
 0x22c   :  { %v250_v44 = vmul.f32 %v368_v35, %v249_v42  ;;  %v256_v45 = vmul.f32 %v370_v43, %v244_v36  ;;  %vm262_vm1 = vweird.f32 %v370_v43 }
 0x22d   :  { %vm263_vm3 = vmor %vm261_vm2, %vm262_vm1 }
 0x22e   :  { %v254_v47 = vsel %vm253_vm0, %v368_v35, %v250_v44  ;;  %v257_v48 = vmul.f32 %v370_v43, %v256_v45 }
 0x22f   :  { %v265_v49 = vmul.f32 %v254_v47, %v231_v22 }
 0x230   :  { %v258_v51 = vmul.f32 0.5, %v257_v48 }
 0x231   :  { %v270_v52 = vmul.f32 %v269_v46, %v265_v49 }
 0x232   :  { %v259_v53 = vsub.f32 1.5, %v258_v51 }
 0x233   :  { %v273_v54 = vadd.f32 %v272_v50, %v270_v52 }
 0x234   :  { %v260_v55 = vmul.f32 %v370_v43, %v259_v53 }
 0x235   :  { %275 = vst.msk [vmem:[#allocation2] sm:$0xff] %vm215_vm12, %v273_v54 }
 0x236   :  { %v264_v56 = vsel %vm263_vm3, %v370_v43, %v260_v55 }
 0x237   :  { %v266_v57 = vmul.f32 %v264_v56, %v232_v27 }
 0x239   :  { %v271_v58 = vmul.f32 %v269_v46, %v266_v57 }
 0x23b   :  { %v274_v59 = vadd.f32 %v272_v50, %v271_v58 }
 0x23d   :  { %276 = vst.msk [vmem:[#allocation2 + $0x8] sm:$0xff] %vm215_vm12, %v274_v59 }
 0x23e   :  { %289 = dma.vmem_to_hbm [thread:$0]  %s282_s30, 256, %s284_s5, [#allocation3], %s404_s6, %s404_s6, %s405_s7  }
 0x23f   :  { %395 = dma.done.wait [#allocation3], 256  }
 0x240   :  { %396 = vsyncadd [#allocation3], 4294967040 }
 0x241   :  { %294 = vsyncpa [#allocation3], 1 }

</bundles_post_ra>
